<compile_context>
chip_gen: v7x
topology: tpu7x:2x2x1
jax: 0.10.0
libtpu: 0.0.40
codegen_flags: <defaults>
</compile_context>

<pallas_src>
import functools

import jax
import jax.numpy as jnp
from jax import lax
from jax.experimental import pallas as pl
from jax.experimental.pallas import tpu as pltpu


def _focal_loss_kernel(logits_ref, targets_ref, out_ref, acc_ref,
                       *, gamma, alpha, n_valid, tiles_per_part):
    t = pl.program_id(1)

    @pl.when(t == 0)
    def _():
        acc_ref[0, 0] = jnp.float32(0.0)

    x = logits_ref[...].astype(jnp.float32)              # (TN, C)
    tn, c = x.shape

    # Numerically stable softmax stats; single exp pass, `x - m` dies here.
    m = jnp.max(x, axis=1, keepdims=True)                # (TN, 1)
    e = jnp.exp(x - m)                                   # (TN, C)
    sumexp = jnp.sum(e, axis=1, keepdims=True)           # (TN, 1)
    lse = jnp.log(sumexp)                                # (TN, 1) exact

    # Gather x[n, targets[n]] straight from the raw tile (select: NaN-safe).
    cls_idx = lax.broadcasted_iota(jnp.int32, (tn, c), 1)
    tgt = targets_ref[...]                               # (TN, 1) int32
    t_x = jnp.sum(jnp.where(cls_idx == tgt, x, 0.0), axis=1, keepdims=True)
    tlp = t_x - m - lse                                  # log_probs[n, targets[n]]

    g = float(gamma)
    if g == 2.0:
        # sum_c (1-p)^2 = C - 2 + sum_c(e^2) * (1/sumexp)^2
        inv = pl.reciprocal(sumexp, approx=True)
        w = (c - 2.0) + jnp.sum(e * e, axis=1, keepdims=True) * (inv * inv)
    elif g == 1.0:
        w = jnp.full_like(sumexp, c - 1.0)               # sum_c (1-p) = C - 1
    elif g == 0.0:
        w = jnp.full_like(sumexp, float(c))
    else:
        inv = pl.reciprocal(sumexp, approx=True)
        one_minus_p = 1.0 - e * inv
        if g == int(g) and g > 0:
            pw = lax.integer_pow(one_minus_p, int(g))    # VPU multiplies
        else:
            # clamp: approx reciprocal may push p infinitesimally above 1.
            pw = jnp.maximum(one_minus_p, 0.0) ** g      # EUP exp*log
        w = jnp.sum(pw, axis=1, keepdims=True)

    # sum_c loss[n, c] = -alpha * tlp[n] * w[n]; mask rows >= N (garbage in
    # ragged / clamped edge blocks), then one XLU reduce into the SMEM scalar.
    row = (-alpha) * tlp * w                             # (TN, 1)
    block_row0 = (pl.program_id(0) * tiles_per_part + t) * tn
    ridx = block_row0 + lax.broadcasted_iota(jnp.int32, (tn, 1), 0)
    acc_ref[0, 0] += jnp.sum(jnp.where(ridx < n_valid, row, 0.0))

    # Final step of this partition: broadcast the scalar into the out block.
    @pl.when(t == pl.num_programs(1) - 1)
    def _():
        partial = acc_ref[0, 0]
        r = lax.broadcasted_iota(jnp.int32, (8, 128), 0)
        l = lax.broadcasted_iota(jnp.int32, (8, 128), 1)
        out_ref[...] = jnp.where((r == 0) & (l == 0), partial, 0.0)


def _vmem_limit_bytes():
    cap = 64 * 1024 * 1024
    try:
        cap = int(getattr(pltpu.get_tpu_info(), "vmem_capacity_bytes", cap))
    except Exception:
        pass
    if cap <= 64 * 1024 * 1024:          # v7x-class: 64 MiB physical VMEM
        return 48 * 1024 * 1024
    return 100 * 1024 * 1024             # v5e / v6e: 128 MiB physical VMEM


def _sublane_multiple(itemsize):
    return {4: 8, 2: 16, 1: 32}.get(int(itemsize), 8)


def _choose_block_n(n, c, itemsize, vmem_limit):
    """Largest row tile that keeps the double-buffered input tile plus ~3 live
    f32 (block_n, C) temporaries inside ~60% of the scoped VMEM limit."""
    sub = _sublane_multiple(itemsize)
    per_row = c * (2 * itemsize + 3 * 4) + 64
    budget = int(0.6 * vmem_limit)
    bn = max(sub, budget // per_row)
    n_rounded = -(-n // sub) * sub                       # no point tiling past N
    bn = min(bn, 4096, n_rounded)
    return max(sub, (bn // sub) * sub)


def focal_loss(logits, targets, *, gamma=2, alpha=0.25, reduction='mean',
               block_n=None):
    """Pallas TPU focal loss. logits: (N, C) float; targets: (N,) int in [0, C)."""
    N, C = logits.shape
    if reduction not in ('mean', 'sum'):
        # TODO(synk): 'none' reduction (per-element (N, C) output) not wired up.
        raise NotImplementedError("reduction must be 'mean' or 'sum'")

    itemsize = jnp.dtype(logits.dtype).itemsize
    vmem_limit = _vmem_limit_bytes()
    sub = _sublane_multiple(itemsize)
    if block_n is None:
        block_n = _choose_block_n(N, C, itemsize, vmem_limit)
    assert block_n % sub == 0 and block_n >= sub

    # Grid layout: (partitions P, tiles-per-partition T). P=2 lets v7x's two
    # TensorCores split the work ("parallel" axis); harmless on 1-TC chips.
    tiles = -(-N // block_n)
    P = 2 if tiles >= 2 else 1
    T = -(-tiles // P)
    last_block = tiles - 1

    targets2d = targets.reshape(N, 1).astype(jnp.int32)

    kernel = functools.partial(
        _focal_loss_kernel, gamma=gamma, alpha=alpha,
        n_valid=N, tiles_per_part=T)

    def in_map(p, t):
        # Clamp block indices that over-cover N (P*T >= tiles); their rows are
        # masked out inside the kernel.
        return (jnp.minimum(p * T + t, last_block), 0)

    cost = pl.CostEstimate(
        flops=10 * N * C,
        transcendentals=N * C + 2 * N,
        bytes_accessed=N * C * itemsize + N * 4 + P * 8 * 128 * 4)

    partials = pl.pallas_call(
        kernel,
        out_shape=jax.ShapeDtypeStruct((P * 8, 128), jnp.float32),
        grid_spec=pltpu.PrefetchScalarGridSpec(
            num_scalar_prefetch=0,
            grid=(P, T),
            in_specs=[
                pl.BlockSpec((block_n, C), in_map),   # logits tile
                pl.BlockSpec((block_n, 1), in_map),   # targets tile
            ],
            out_specs=pl.BlockSpec((8, 128), lambda p, t: (p, 0)),
            scratch_shapes=[pltpu.SMEM((1, 1), jnp.float32)],  # scalar accumulator
        ),
        compiler_params=pltpu.CompilerParams(
            dimension_semantics=("parallel", "arbitrary"),
            vmem_limit_bytes=vmem_limit),
        cost_estimate=cost,
    )(logits, targets2d)

    total = jnp.sum(partials)
    if reduction == 'mean':
        return total / float(N * C)
    return total


def _focal_loss_ref(logits, targets, gamma=2, alpha=0.25, reduction='mean'):
    log_probs = jax.nn.log_softmax(logits.astype(jnp.float32), axis=1)
    probs = jnp.exp(log_probs)
    tlp = jnp.take_along_axis(log_probs, targets.reshape(-1, 1), axis=1)
    loss = -alpha * (1.0 - probs) ** gamma * tlp
    return jnp.mean(loss) if reduction == 'mean' else jnp.sum(loss)


if __name__ == "__main__":
    key = jax.random.PRNGKey(0)
    k1, k2, k3, k4 = jax.random.split(key, 4)

    # Case 1: small shape consistent with the module (batch=8, classes=32),
    # default gamma=2 (algebraic-collapse path), auto block_n, single tile.
    N, C = 8, 32
    logits = jax.random.normal(k1, (N, C), dtype=jnp.float32)
    targets = jax.random.randint(k2, (N,), 0, C, dtype=jnp.int32)
    out = jax.block_until_ready(
        focal_loss(logits, targets, gamma=2, alpha=0.25, reduction='mean'))
    ref = _focal_loss_ref(logits, targets)
    assert jnp.allclose(out, ref, rtol=2e-4, atol=1e-6), (out, ref)

    # Case 2: N not a multiple of block_n -> ragged edge block (no host pad),
    # multi-tile accumulation, clamped over-covering block, 2-partition grid.
    N2, C2 = 200, 32
    logits2 = jax.random.normal(k3, (N2, C2), dtype=jnp.float32)
    targets2 = jax.random.randint(k4, (N2,), 0, C2, dtype=jnp.int32)
    out2 = jax.block_until_ready(
        focal_loss(logits2, targets2, gamma=2, alpha=0.25,
                   reduction='mean', block_n=64))
    ref2 = _focal_loss_ref(logits2, targets2, reduction='mean')
    assert jnp.allclose(out2, ref2, rtol=2e-4, atol=1e-6), (out2, ref2)

    # Case 3: non-integer gamma (generic float-pow path) with 'sum' reduction.
    out3 = jax.block_until_ready(
        focal_loss(logits2, targets2, gamma=1.5, alpha=0.25,
                   reduction='sum', block_n=64))
    ref3 = _focal_loss_ref(logits2, targets2, gamma=1.5, reduction='sum')
    assert jnp.allclose(out3, ref3, rtol=2e-4, atol=1e-5), (out3, ref3)

    print("KERNEL_OK")
</pallas_src>

<mosaic_0001>
module attributes {stable_mosaic.version = 11 : i64} {
  func.func @_focal_loss_kernel(%arg0: i32, %arg1: i32, %arg2: memref<8x32xf32, #tpu.memory_space<vmem>>, %arg3: memref<8x1xi32, #tpu.memory_space<vmem>>, %arg4: memref<8x128xf32, #tpu.memory_space<vmem>>, %arg5: memref<1x1xf32, #tpu.memory_space<smem>>) attributes {dimension_semantics = [#tpu.dimension_semantics<parallel>, #tpu.dimension_semantics<arbitrary>], iteration_bounds = array<i64: 1, 1>, scalar_prefetch = 0 : i64, scratch_operands = 1 : i64, tpu.core_type = #tpu.core_type<tc>, window_params = [{transform_indices = @transform_0, window_bounds = array<i64: 8, 32>}, {transform_indices = @transform_1, window_bounds = array<i64: 8, 1>}, {transform_indices = @transform_2, window_bounds = array<i64: 8, 128>}]} {
    %c0_i32 = arith.constant 0 : i32
    %0 = arith.cmpi eq, %arg1, %c0_i32 : i32
    %1 = arith.extui %0 : i1 to i32
    %c0_i32_0 = arith.constant 0 : i32
    %2 = arith.cmpi ne, %1, %c0_i32_0 : i32
    scf.if %2 {
      %cst_19 = arith.constant 0.000000e+00 : f32
      %c0_20 = arith.constant 0 : index
      %c0_21 = arith.constant 0 : index
      %53 = memref.load %arg5[%c0_20, %c0_21] : memref<1x1xf32, #tpu.memory_space<smem>>
      memref.store %cst_19, %arg5[%c0_20, %c0_21] : memref<1x1xf32, #tpu.memory_space<smem>>
    } else {
    }
    %c0 = arith.constant 0 : index
    %c0_1 = arith.constant 0 : index
    %3 = vector.load %arg2[%c0, %c0_1] : memref<8x32xf32, #tpu.memory_space<vmem>>, vector<8x32xf32>
    %cst = arith.constant dense<0xFF800000> : vector<8xf32>
    %4 = vector.multi_reduction <maximumf>, %3, %cst [1] : vector<8x32xf32> to vector<8xf32>
    %5 = vector.shape_cast %4 : vector<8xf32> to vector<8x1xf32>
    %6 = vector.broadcast %5 : vector<8x1xf32> to vector<8x32xf32>
    %7 = arith.subf %3, %6 : vector<8x32xf32>
    %8 = math.exp %7 : vector<8x32xf32>
    %cst_2 = arith.constant dense<0.000000e+00> : vector<8xf32>
    %9 = vector.multi_reduction <add>, %8, %cst_2 [1] : vector<8x32xf32> to vector<8xf32>
    %10 = vector.shape_cast %9 : vector<8xf32> to vector<8x1xf32>
    %11 = math.log %10 : vector<8x1xf32>
    %12 = tpu.iota {dimensions = array<i32: 1>} : vector<8x32xi32>
    %c0_3 = arith.constant 0 : index
    %c0_4 = arith.constant 0 : index
    %13 = vector.load %arg3[%c0_3, %c0_4] : memref<8x1xi32, #tpu.memory_space<vmem>>, vector<8x1xi32>
    %14 = vector.broadcast %13 : vector<8x1xi32> to vector<8x32xi32>
    %15 = arith.cmpi eq, %12, %14 : vector<8x32xi32>
    %cst_5 = arith.constant 0.000000e+00 : f32
    %16 = vector.broadcast %cst_5 : f32 to vector<8x32xf32>
    %17 = arith.select %15, %3, %16 : vector<8x32xi1>, vector<8x32xf32>
    %cst_6 = arith.constant dense<0.000000e+00> : vector<8xf32>
    %18 = vector.multi_reduction <add>, %17, %cst_6 [1] : vector<8x32xf32> to vector<8xf32>
    %19 = vector.shape_cast %18 : vector<8xf32> to vector<8x1xf32>
    %20 = arith.subf %19, %5 : vector<8x1xf32>
    %21 = arith.subf %20, %11 : vector<8x1xf32>
    %22 = tpu.reciprocal %10 {approx = true} : vector<8x1xf32> -> vector<8x1xf32>
    %23 = arith.mulf %8, %8 : vector<8x32xf32>
    %cst_7 = arith.constant dense<0.000000e+00> : vector<8xf32>
    %24 = vector.multi_reduction <add>, %23, %cst_7 [1] : vector<8x32xf32> to vector<8xf32>
    %25 = vector.shape_cast %24 : vector<8xf32> to vector<8x1xf32>
    %26 = arith.mulf %22, %22 : vector<8x1xf32>
    %27 = arith.mulf %25, %26 : vector<8x1xf32>
    %cst_8 = arith.constant 3.000000e+01 : f32
    %28 = vector.broadcast %cst_8 : f32 to vector<8x1xf32>
    %29 = arith.addf %28, %27 : vector<8x1xf32>
    %cst_9 = arith.constant -2.500000e-01 : f32
    %30 = vector.broadcast %cst_9 : f32 to vector<8x1xf32>
    %31 = arith.mulf %30, %21 : vector<8x1xf32>
    %32 = arith.mulf %31, %29 : vector<8x1xf32>
    %c1_i32 = arith.constant 1 : i32
    %33 = arith.muli %arg0, %c1_i32 : i32
    %34 = arith.addi %33, %arg1 : i32
    %c8_i32 = arith.constant 8 : i32
    %35 = arith.muli %34, %c8_i32 : i32
    %36 = tpu.iota {dimensions = array<i32: 0>} : vector<8x1xi32>
    %37 = vector.broadcast %35 : i32 to vector<8x1xi32>
    %38 = arith.addi %37, %36 : vector<8x1xi32>
    %c0_10 = arith.constant 0 : index
    %c0_11 = arith.constant 0 : index
    %39 = memref.load %arg5[%c0_10, %c0_11] : memref<1x1xf32, #tpu.memory_space<smem>>
    %c8_i32_12 = arith.constant 8 : i32
    %40 = vector.broadcast %c8_i32_12 : i32 to vector<8x1xi32>
    %41 = arith.cmpi slt, %38, %40 : vector<8x1xi32>
    %cst_13 = arith.constant 0.000000e+00 : f32
    %42 = vector.broadcast %cst_13 : f32 to vector<8x1xf32>
    %43 = arith.select %41, %32, %42 : vector<8x1xi1>, vector<8x1xf32>
    %44 = vector.shape_cast %43 : vector<8x1xf32> to vector<1x8x1xf32>
    %cst_14 = arith.constant dense<0.000000e+00> : vector<1xf32>
    %45 = vector.multi_reduction <add>, %44, %cst_14 [1, 2] : vector<1x8x1xf32> to vector<1xf32>
    %46 = vector.shape_cast %45 : vector<1xf32> to vector<1x1x1xf32>
    %47 = vector.extract %46[0, 0, 0] : f32 from vector<1x1x1xf32>
    %48 = arith.addf %39, %47 : f32
    %c0_15 = arith.constant 0 : index
    %c0_16 = arith.constant 0 : index
    %49 = memref.load %arg5[%c0_15, %c0_16] : memref<1x1xf32, #tpu.memory_space<smem>>
    memref.store %48, %arg5[%c0_15, %c0_16] : memref<1x1xf32, #tpu.memory_space<smem>>
    %c0_i32_17 = arith.constant 0 : i32
    %50 = arith.cmpi eq, %arg1, %c0_i32_17 : i32
    %51 = arith.extui %50 : i1 to i32
    %c0_i32_18 = arith.constant 0 : i32
    %52 = arith.cmpi ne, %51, %c0_i32_18 : i32
    scf.if %52 {
      %c0_19 = arith.constant 0 : index
      %c0_20 = arith.constant 0 : index
      %53 = memref.load %arg5[%c0_19, %c0_20] : memref<1x1xf32, #tpu.memory_space<smem>>
      %54 = tpu.iota {dimensions = array<i32: 0>} : vector<8x128xi32>
      %55 = tpu.iota {dimensions = array<i32: 1>} : vector<8x128xi32>
      %c0_i32_21 = arith.constant 0 : i32
      %56 = vector.broadcast %c0_i32_21 : i32 to vector<8x128xi32>
      %57 = arith.cmpi eq, %54, %56 : vector<8x128xi32>
      %c0_i32_22 = arith.constant 0 : i32
      %58 = vector.broadcast %c0_i32_22 : i32 to vector<8x128xi32>
      %59 = arith.cmpi eq, %55, %58 : vector<8x128xi32>
      %60 = arith.andi %57, %59 : vector<8x128xi1>
      %cst_23 = arith.constant 0.000000e+00 : f32
      %61 = vector.broadcast %53 : f32 to vector<8x128xf32>
      %62 = vector.broadcast %cst_23 : f32 to vector<8x128xf32>
      %63 = arith.select %60, %61, %62 : vector<8x128xi1>, vector<8x128xf32>
      %c0_24 = arith.constant 0 : index
      %c0_25 = arith.constant 0 : index
      %64 = vector.load %arg4[%c0_24, %c0_25] : memref<8x128xf32, #tpu.memory_space<vmem>>, vector<8x128xf32>
      tpu.vector_store %arg4[%c0_24, %c0_25], %63 {strides = array<i32>} : memref<8x128xf32, #tpu.memory_space<vmem>>, vector<8x128xf32>,
    } else {
    }
    return
  }
  func.func @transform_0(%arg0: i32, %arg1: i32) -> (i32, i32) {
    %c1_i32 = arith.constant 1 : i32
    %0 = arith.muli %arg0, %c1_i32 : i32
    %1 = arith.addi %0, %arg1 : i32
    %c0_i32 = arith.constant 0 : i32
    %2 = arith.minsi %1, %c0_i32 : i32
    %c0_i32_0 = arith.constant 0 : i32
    %c0_i32_1 = arith.constant 0 : i32
    return %2, %c0_i32_0 : i32, i32
  }
  func.func @transform_1(%arg0: i32, %arg1: i32) -> (i32, i32) {
    %c1_i32 = arith.constant 1 : i32
    %0 = arith.muli %arg0, %c1_i32 : i32
    %1 = arith.addi %0, %arg1 : i32
    %c0_i32 = arith.constant 0 : i32
    %2 = arith.minsi %1, %c0_i32 : i32
    %c0_i32_0 = arith.constant 0 : i32
    %c0_i32_1 = arith.constant 0 : i32
    return %2, %c0_i32_0 : i32, i32
  }
  func.func @transform_2(%arg0: i32, %arg1: i32) -> (i32, i32) {
    %c0_i32 = arith.constant 0 : i32
    %c0_i32_0 = arith.constant 0 : i32
    return %arg0, %c0_i32 : i32, i32
  }
}

</mosaic_0001>

<bundles_post_ra>
// kernel: tpu_custom_call.1
= control target key start
LH: loop header
LB: loop body
LE: loop exit
PB: predicated region body
PF: predicated region fallthrough
CT: control target
= control target key end

     0   :  { %vm73_vm0 = vcmask 261120   ;;  %s241_s0 = inlined_call_operand.vmem [shape: f32[8,32], index: 0, kind: input, shape index: {}]   ;;  %s242_s1 = inlined_call_operand.vmem [shape: s32[8,1], index: 1, kind: input, shape index: {}]   ;;  %s243_s2 = inlined_call_operand.hbm [shape: f32[8,128], index: 2, kind: output, shape index: {}]  }
   0x1   :  { %v72_v0 = vld [vmem:[%s241_s0] sm:$0xff] }
   0x2   :  { %7 = vsyncpa [#allocation4], 0  ;;  %v74_v1 = vsel %vm73_vm0, %v72_v0, -inf  ;;  %v202_v2 = vmov 0   ;;  %v87_v3 = vld [vmem:[%s242_s1] sm:$0xff]  ;;  %v85_v7 = vlaneseq  ;;  %vm117_vm2 = vcmask 7168  }
   0x3   :  { %171 = vset.pattern.permute.xlu0 %v202_v2  ;;  %s203_s0 = smov [#allocation3]  }
   0x4   :  { %75 = vmax.xlane.f32.xlu0 %v74_v1  ;;  %v86_v8 = vand.u32 127, %v85_v7  ;;  %v111_v37 = vshrl.u32 %v85_v7, 7  ;;  %s147_s1 = sshll.u32 %s203_s0, 4  ;;  %s148_s1 = int_to_ptr.vmem [resolvable:$true] %s147_s1 }
   0x5   :  { %s178_s14 = scalar_lea.vmem %s148_s1, 128  ;;  %p183_p1 = scmp.lt.s32.totalorder %s148_s1, %s148_s1 }
   0x6   :  { %vm135_vm3 = vcmp.eq.s32.totalorder %v111_v37, 0  ;;  %vm136_vm4 = vcmp.eq.s32.totalorder %v86_v8, 0  ;;  %p179_p0 = scmp.ne.s32.totalorder %s148_s1, %s178_s14  ;;  %p184_p2 = scmp.lt.s32.totalorder %s178_s14, %s178_s14 }
   0x7   :  { %vm137_vm5 = vmand %vm135_vm3, %vm136_vm4 }
   0x8   :  { %p185_p3 = por %p184_p2, %p183_p1 }
   0xa   :  { %p186_p4 = pnand %p185_p3, %p179_p0 }
  0x1a   :  { %89 = vperm.xlu0 %171, %v87_v3  }
  0x91   :  { %v76_v4 = vpop.xlane.xlu0 %75 }
  0x92   :  { %v77_v5 = vsub.f32 %v72_v0, %v76_v4 }
  0x94   :  { %v78_v6 = vmul.f32 1.442695, %v77_v5 }
  0x96   :  { %172 = vpow2.f32 %v78_v6 }
  0x99   :  { %v90_v9 = vpop.permute.xlu0 %89 }
  0x9a   :  { %vm91_vm1 = vcmp.eq.s32.totalorder %v86_v8, %v90_v9 }
  0x9b   :  { %v92_v11 = vsel %vm91_vm1, %v72_v0, 0.0 }
  0x9c   :  { %v93_v13 = vsel %vm73_vm0, %v92_v11, 0.0 }
  0xa0   :  { %v173_v10 = vpop.eup %172 }
  0xa1   :  { %v80_v12 = vsel %vm73_vm0, %v173_v10, 0.0  ;;  %v99_v14 = vmul.f32 %v173_v10, %v173_v10 }
  0xa2   :  { %81 = vadd.xlane.f32.xlu1 %v80_v12 }
  0xa3   :  { %v100_v15 = vsel %vm73_vm0, %v99_v14, 0.0 }
  0xa6   :  { %94 = vadd.xlane.f32.xlu1 %v93_v13 }
  0xaa   :  { %101 = vadd.xlane.f32.xlu1 %v100_v15 }
 0x12f   :  { %v82_v16 = vpop.xlane.xlu1 %81 }
 0x130   :  { %174 = vlog2.f32 %v82_v16 }
 0x131   :  { %176 = vrcp.f32 %v82_v16 }
 0x133   :  { %v95_v17 = vpop.xlane.xlu1 %94 }
 0x134   :  { %v96_v21 = vsub.f32 %v95_v17, %v76_v4 }
 0x137   :  { %v102_v24 = vpop.xlane.xlu1 %101 }
 0x13a   :  { %v175_v18 = vpop.eup %174 }
 0x13b   :  { %v177_v19 = vpop.eup %176  ;;  %v84_v20 = vmul.f32 0.6931472, %v175_v18 }
 0x13c   :  { %v103_v22 = vmul.f32 %v177_v19, %v177_v19 }
 0x13d   :  { %v97_v23 = vsub.f32 %v96_v21, %v84_v20 }
 0x13e   :  { %v104_v25 = vmul.f32 %v103_v22, %v102_v24 }
 0x13f   :  { %v106_v26 = vmul.f32 -0.25, %v97_v23 }
 0x140   :  { %v105_v27 = vadd.f32 30.0, %v104_v25 }
 0x142   :  { %v107_v28 = vmul.f32 %v106_v26, %v105_v27 }
 0x144   :  { %v118_v29 = vsel %vm117_vm2, %v107_v28, 0.0 }
 0x145   :  { %119 = vadd.xlane.f32.xlu1 %v118_v29 }
 0x1d2   :  { %v120_v30 = vpop.xlane.xlu1 %119 }
 0x1d3   :  { %v121_v31 = vrot.slane %v120_v30, 4 }
 0x1d5   :  { %v122_v32 = vadd.f32 %v121_v31, %v120_v30 }
 0x1d7   :  { %v123_v33 = vrot.slane %v122_v32, 2 }
 0x1d9   :  { %v124_v34 = vadd.f32 %v123_v33, %v122_v32 }
 0x1db   :  { %v125_v35 = vrot.slane %v124_v34, 1 }
 0x1dd   :  { %v126_v36 = vadd.f32 %v125_v35, %v124_v34 }
 0x1df   :  { %167 = vpush %v126_v36 }
 0x210   :  { %s168_s13 = spop %167 }
 0x211   :  { %v138_v38 = vstv %s168_s13 }
 0x212   :  { %v139_v39 = vsel %vm137_vm5, %v138_v38, 0.0 }
 0x213   :  { %140 = vst [vmem:[#allocation3] sm:$0xff] %v139_v39 }
 0x214   :  { %189 = shalt.err (!%p186_p4)
}
 0x215   :  { %s190_s17 = scalar_lea.hbm %s243_s2, 128 }
 0x216   :  { %p191_p5 = scmp.ne.s32.totalorder %s243_s2, %s190_s17  ;;  %p194_p6 = scmp.lt.u32.totalorder %s190_s17, %s243_s2 }
 0x218   :  { %p196_p7 = pnand %p194_p6, %p191_p5 }
 0x21a   :  { %199 = shalt.err (!%p196_p7)
}
 0x21b   :  { %150 = dma.vmem_to_hbm [thread:$0]  %s148_s1, 128, %s243_s2, [#allocation4]  }
 0x21c   :  { %200 = dma.done.wait [#allocation4], 128  }
 0x21d   :  { %201 = vsyncadd [#allocation4], 4294967168 }
 0x21e   :  { %154 = vsyncpa [#allocation4], 1 }

</bundles_post_ra>
